<compile_context>
chip_gen: v7x
topology: tpu7x:2x2x1
jax: 0.10.0
libtpu: 0.0.40
codegen_flags: <defaults>
</compile_context>

<pallas_src>
import functools

import jax
import jax.numpy as jnp
from jax.experimental import pallas as pl
from jax.experimental.pallas import tpu as pltpu

GAMMA_NEG = 4.0
GAMMA_POS = 1.0
CLIP = 0.05
EPS = 1e-8


def _round_up(v, m):
    return (v + m - 1) // m * m


def _int_pow(b, n):
    """b**n for a static non-negative integer n via repeated squaring (VPU muls only)."""
    n = int(n)
    if n == 0:
        return jnp.ones_like(b)
    result = None
    cur = b
    while n:
        if n & 1:
            result = cur if result is None else result * cur
        n >>= 1
        if n:
            cur = cur * cur
    return result


def _asl_kernel(x_ref, y_ref, out_ref, acc_ref, *,
                gamma_neg, gamma_pos, clip, eps, use_int_pow):
    step = pl.program_id(1)

    @pl.when(step == 0)
    def _():
        acc_ref[...] = jnp.zeros_like(acc_ref)

    x = x_ref[...].astype(jnp.float32)
    y = y_ref[...].astype(jnp.float32)

    pos = y > 0.0                     # targets are a binarized multi-label vector
    xs_pos = x
    xs_neg = 1.0 - x
    if clip is not None and clip > 0:
        xs_neg = jnp.minimum(xs_neg + clip, 1.0)

    # y*log(xs_pos) + (1-y)*log(xs_neg) with binary y == one log on the selected
    # branch: 1 EUP transcendental per element instead of 2.
    ce = jnp.log(jnp.maximum(jnp.where(pos, xs_pos, xs_neg), eps))

    if gamma_neg > 0 or gamma_pos > 0:
        # base = 1 - xs_pos*y - xs_neg*(1-y)  collapses to a select with binary y.
        base = jnp.where(pos, 1.0 - xs_pos, 1.0 - xs_neg)
        if use_int_pow:
            # Integer exponents -> pure VPU multiplies, no exp/log on the EUP.
            # Also avoids the 0**0 -> NaN pitfall of pow lowered as exp(e*log(b)).
            w = jnp.where(pos, _int_pow(base, gamma_pos), _int_pow(base, gamma_neg))
        else:
            w = jnp.power(base, jnp.where(pos, gamma_pos, gamma_neg))
        loss = ce * w
    else:
        loss = ce

    # Fold the row tile down to an (8, C) partial with elementwise adds (VPU);
    # the expensive cross-lane/sublane reduction happens only once at the end.
    r, c = loss.shape
    acc_ref[...] += jnp.sum(loss.reshape(r // 8, 8, c), axis=0)

    @pl.when(step == pl.num_programs(1) - 1)
    def _():
        total = -jnp.sum(acc_ref[...])
        out_ref[...] = jnp.full(out_ref.shape, total, dtype=out_ref.dtype)


def asymmetric_loss_optimized(x, y, *, gamma_neg=GAMMA_NEG, gamma_pos=GAMMA_POS,
                              clip=CLIP, eps=EPS,
                              max_block_bytes=2 << 20, max_rows=2048,
                              num_shards=2):
    """Scalar asymmetric loss -sum(loss), matching AsymmetricLossOptimized.forward.

    Like the reference forward, no sigmoid is applied to x.
    """
    assert x.shape == y.shape and x.ndim == 2
    B, C = x.shape

    # ---- tile sizing: big, VMEM-safe, lane-dense blocks --------------------
    C_pad = _round_up(C, 128)
    itemsize = jnp.dtype(x.dtype).itemsize
    bytes_per_row = C_pad * itemsize
    rows_fit = max(8, (min(max_rows, max_block_bytes // bytes_per_row) // 8) * 8)
    row_tile = max(8, min(rows_fit, _round_up(B, 8)))
    # TODO(synk): for extremely large num_classes also tile the class dim (2-D grid).

    n_tiles = -(-B // row_tile)
    shards = num_shards if n_tiles >= num_shards else 1   # megacore split (v7x)
    B_pad = _round_up(B, row_tile * shards)
    steps = B_pad // (row_tile * shards)

    # Zero-pad ragged edges; (x=0, y=0) elements contribute exactly 0 loss.
    if (B_pad, C_pad) != (B, C):
        x = jnp.pad(x, ((0, B_pad - B), (0, C_pad - C)))
        y = jnp.pad(y, ((0, B_pad - B), (0, C_pad - C)))

    def _small_nonneg_int(g):
        g = float(g)
        return g >= 0.0 and g.is_integer() and g <= 16.0

    use_int_pow = _small_nonneg_int(gamma_pos) and _small_nonneg_int(gamma_neg)

    kernel = functools.partial(
        _asl_kernel,
        gamma_neg=float(gamma_neg), gamma_pos=float(gamma_pos),
        clip=clip, eps=float(eps), use_int_pow=use_int_pow)

    row_map = lambda s, i: (s * steps + i, 0)

    out = pl.pallas_call(
        kernel,
        out_shape=jax.ShapeDtypeStruct((shards, 8, 128), jnp.float32),
        grid_spec=pltpu.PrefetchScalarGridSpec(
            num_scalar_prefetch=0,
            grid=(shards, steps),
            in_specs=[
                pl.BlockSpec((row_tile, C_pad), row_map),
                pl.BlockSpec((row_tile, C_pad), row_map),
            ],
            out_specs=pl.BlockSpec((1, 8, 128), lambda s, i: (s, 0, 0)),
            scratch_shapes=[pltpu.VMEM((8, C_pad), jnp.float32)],
        ),
        compiler_params=pltpu.CompilerParams(
            dimension_semantics=("parallel", "arbitrary"),
        ),
    )(x, y)   # native dtype DMA'd; kernel casts to f32 internally
    return jnp.sum(out[:, 0, 0])


def _reference(x, y, gamma_neg=GAMMA_NEG, gamma_pos=GAMMA_POS, clip=CLIP, eps=EPS):
    # Pure-JAX mirror of the PyTorch forward.
    x = x.astype(jnp.float32)
    y = y.astype(jnp.float32)
    anti = 1.0 - y
    xs_pos = x
    xs_neg = 1.0 - x
    if clip is not None and clip > 0:
        xs_neg = jnp.minimum(xs_neg + clip, 1.0)
    loss = y * jnp.log(jnp.maximum(xs_pos, eps))
    loss = loss + anti * jnp.log(jnp.maximum(xs_neg, eps))
    w = jnp.power(1.0 - xs_pos * y - xs_neg * anti, gamma_pos * y + gamma_neg * anti)
    return -(loss * w).sum()


if __name__ == "__main__":
    key = jax.random.PRNGKey(0)
    kx, ky, kx2, ky2 = jax.random.split(key, 4)

    # Small aligned problem: single grid step (whole array as one block).
    B, C = 16, 128
    x = jax.random.uniform(kx, (B, C), dtype=jnp.float32, minval=0.01, maxval=0.99)
    y = (jax.random.uniform(ky, (B, C)) < 0.1).astype(jnp.float32)

    out = asymmetric_loss_optimized(x, y)
    out = jax.block_until_ready(out)
    ref = _reference(x, y)
    assert jnp.allclose(out, ref, rtol=1e-4, atol=1e-2), (out, ref)

    # Ragged shapes + forced tiny blocks: exercises padding, multi-step
    # accumulation and the 2-shard (megacore) partial-sum path.
    B2, C2 = 300, 200
    x2 = jax.random.uniform(kx2, (B2, C2), dtype=jnp.float32, minval=0.01, maxval=0.99)
    y2 = (jax.random.uniform(ky2, (B2, C2)) < 0.2).astype(jnp.float32)

    out2 = asymmetric_loss_optimized(x2, y2, max_block_bytes=8192)
    out2 = jax.block_until_ready(out2)
    ref2 = _reference(x2, y2)
    assert jnp.allclose(out2, ref2, rtol=1e-4, atol=1e-2), (out2, ref2)

    print("KERNEL_OK")
</pallas_src>

<mosaic_0001>
module attributes {stable_mosaic.version = 11 : i64} {
  func.func @_asl_kernel(%arg0: i32, %arg1: i32, %arg2: memref<16x128xf32, #tpu.memory_space<vmem>>, %arg3: memref<16x128xf32, #tpu.memory_space<vmem>>, %arg4: memref<1x8x128xf32, #tpu.memory_space<vmem>>, %arg5: memref<8x128xf32, #tpu.memory_space<vmem>>) attributes {dimension_semantics = [#tpu.dimension_semantics<parallel>, #tpu.dimension_semantics<arbitrary>], iteration_bounds = array<i64: 1, 1>, scalar_prefetch = 0 : i64, scratch_operands = 1 : i64, tpu.core_type = #tpu.core_type<tc>, window_params = [{transform_indices = @transform_0, window_bounds = array<i64: 16, 128>}, {transform_indices = @transform_1, window_bounds = array<i64: 16, 128>}, {transform_indices = @transform_2, window_bounds = array<i64: 1, 8, 128>}]} {
    %c0_i32 = arith.constant 0 : i32
    %0 = arith.cmpi eq, %arg1, %c0_i32 : i32
    %1 = arith.extui %0 : i1 to i32
    %c0_i32_0 = arith.constant 0 : i32
    %2 = arith.cmpi ne, %1, %c0_i32_0 : i32
    scf.if %2 {
      %cst_17 = arith.constant 0.000000e+00 : f32
      %34 = vector.broadcast %cst_17 : f32 to vector<8x128xf32>
      %c0_18 = arith.constant 0 : index
      %c0_19 = arith.constant 0 : index
      %35 = vector.load %arg5[%c0_18, %c0_19] : memref<8x128xf32, #tpu.memory_space<vmem>>, vector<8x128xf32>
      tpu.vector_store %arg5[%c0_18, %c0_19], %34 {strides = array<i32>} : memref<8x128xf32, #tpu.memory_space<vmem>>, vector<8x128xf32>,
    } else {
    }
    %c0 = arith.constant 0 : index
    %c0_1 = arith.constant 0 : index
    %3 = vector.load %arg2[%c0, %c0_1] : memref<16x128xf32, #tpu.memory_space<vmem>>, vector<16x128xf32>
    %c0_2 = arith.constant 0 : index
    %c0_3 = arith.constant 0 : index
    %4 = vector.load %arg3[%c0_2, %c0_3] : memref<16x128xf32, #tpu.memory_space<vmem>>, vector<16x128xf32>
    %cst = arith.constant 0.000000e+00 : f32
    %5 = vector.broadcast %cst : f32 to vector<16x128xf32>
    %6 = arith.cmpf ogt, %4, %5 : vector<16x128xf32>
    %cst_4 = arith.constant 1.000000e+00 : f32
    %7 = vector.broadcast %cst_4 : f32 to vector<16x128xf32>
    %8 = arith.subf %7, %3 : vector<16x128xf32>
    %cst_5 = arith.constant 5.000000e-02 : f32
    %9 = vector.broadcast %cst_5 : f32 to vector<16x128xf32>
    %10 = arith.addf %8, %9 : vector<16x128xf32>
    %cst_6 = arith.constant 1.000000e+00 : f32
    %11 = vector.broadcast %cst_6 : f32 to vector<16x128xf32>
    %12 = arith.minimumf %10, %11 : vector<16x128xf32>
    %13 = arith.select %6, %3, %12 : vector<16x128xi1>, vector<16x128xf32>
    %cst_7 = arith.constant 9.99999993E-9 : f32
    %14 = vector.broadcast %cst_7 : f32 to vector<16x128xf32>
    %15 = arith.maximumf %13, %14 : vector<16x128xf32>
    %16 = math.log %15 : vector<16x128xf32>
    %cst_8 = arith.constant 1.000000e+00 : f32
    %17 = vector.broadcast %cst_8 : f32 to vector<16x128xf32>
    %18 = arith.subf %17, %3 : vector<16x128xf32>
    %cst_9 = arith.constant 1.000000e+00 : f32
    %19 = vector.broadcast %cst_9 : f32 to vector<16x128xf32>
    %20 = arith.subf %19, %12 : vector<16x128xf32>
    %21 = arith.select %6, %18, %20 : vector<16x128xi1>, vector<16x128xf32>
    %22 = arith.mulf %21, %21 : vector<16x128xf32>
    %23 = arith.mulf %22, %22 : vector<16x128xf32>
    %24 = arith.select %6, %21, %23 : vector<16x128xi1>, vector<16x128xf32>
    %25 = arith.mulf %16, %24 : vector<16x128xf32>
    %c0_10 = arith.constant 0 : index
    %c0_11 = arith.constant 0 : index
    %26 = vector.load %arg5[%c0_10, %c0_11] : memref<8x128xf32, #tpu.memory_space<vmem>>, vector<8x128xf32>
    %27 = vector.shape_cast %25 : vector<16x128xf32> to vector<2x8x128xf32>
    %cst_12 = arith.constant dense<0.000000e+00> : vector<8x128xf32>
    %28 = vector.multi_reduction <add>, %27, %cst_12 [0] : vector<2x8x128xf32> to vector<8x128xf32>
    %29 = arith.addf %26, %28 : vector<8x128xf32>
    %c0_13 = arith.constant 0 : index
    %c0_14 = arith.constant 0 : index
    %30 = vector.load %arg5[%c0_13, %c0_14] : memref<8x128xf32, #tpu.memory_space<vmem>>, vector<8x128xf32>
    tpu.vector_store %arg5[%c0_13, %c0_14], %29 {strides = array<i32>} : memref<8x128xf32, #tpu.memory_space<vmem>>, vector<8x128xf32>,
    %c0_i32_15 = arith.constant 0 : i32
    %31 = arith.cmpi eq, %arg1, %c0_i32_15 : i32
    %32 = arith.extui %31 : i1 to i32
    %c0_i32_16 = arith.constant 0 : i32
    %33 = arith.cmpi ne, %32, %c0_i32_16 : i32
    scf.if %33 {
      %c0_17 = arith.constant 0 : index
      %c0_18 = arith.constant 0 : index
      %34 = vector.load %arg5[%c0_17, %c0_18] : memref<8x128xf32, #tpu.memory_space<vmem>>, vector<8x128xf32>
      %35 = vector.shape_cast %34 : vector<8x128xf32> to vector<1x8x128xf32>
      %cst_19 = arith.constant dense<0.000000e+00> : vector<1xf32>
      %36 = vector.multi_reduction <add>, %35, %cst_19 [1, 2] : vector<1x8x128xf32> to vector<1xf32>
      %37 = vector.shape_cast %36 : vector<1xf32> to vector<1x1x1xf32>
      %38 = vector.extract %37[0, 0, 0] : f32 from vector<1x1x1xf32>
      %cst_20 = arith.constant 0.000000e+00 : f32
      %39 = arith.subf %cst_20, %38 : f32
      %40 = vector.broadcast %39 : f32 to vector<1x8x128xf32>
      %c0_21 = arith.constant 0 : index
      %c0_22 = arith.constant 0 : index
      %c0_23 = arith.constant 0 : index
      %41 = vector.load %arg4[%c0_21, %c0_22, %c0_23] : memref<1x8x128xf32, #tpu.memory_space<vmem>>, vector<1x8x128xf32>
      tpu.vector_store %arg4[%c0_21, %c0_22, %c0_23], %40 {strides = array<i32>} : memref<1x8x128xf32, #tpu.memory_space<vmem>>, vector<1x8x128xf32>,
    } else {
    }
    return
  }
  func.func @transform_0(%arg0: i32, %arg1: i32) -> (i32, i32) {
    %c1_i32 = arith.constant 1 : i32
    %0 = arith.muli %arg0, %c1_i32 : i32
    %1 = arith.addi %0, %arg1 : i32
    %c0_i32 = arith.constant 0 : i32
    %c0_i32_0 = arith.constant 0 : i32
    return %1, %c0_i32 : i32, i32
  }
  func.func @transform_1(%arg0: i32, %arg1: i32) -> (i32, i32) {
    %c1_i32 = arith.constant 1 : i32
    %0 = arith.muli %arg0, %c1_i32 : i32
    %1 = arith.addi %0, %arg1 : i32
    %c0_i32 = arith.constant 0 : i32
    %c0_i32_0 = arith.constant 0 : i32
    return %1, %c0_i32 : i32, i32
  }
  func.func @transform_2(%arg0: i32, %arg1: i32) -> (i32, i32, i32) {
    %c0_i32 = arith.constant 0 : i32
    %c0_i32_0 = arith.constant 0 : i32
    %c0_i32_1 = arith.constant 0 : i32
    return %arg0, %c0_i32, %c0_i32_0 : i32, i32, i32
  }
}

</mosaic_0001>

<bundles_post_ra>
// kernel: tpu_custom_call.1
= control target key start
LH: loop header
LB: loop body
LE: loop exit
PB: predicated region body
PF: predicated region fallthrough
CT: control target
= control target key end

     0   :  { %7 = vsyncpa [#allocation4], 0  ;;  %s270_s0 = inlined_call_operand.hbm [shape: f32[16,128], index: 0, kind: input, shape index: {}]   ;;  %s271_s1 = inlined_call_operand.hbm [shape: f32[16,128], index: 1, kind: input, shape index: {}]   ;;  %s272_s2 = inlined_call_operand.hbm [shape: f32[1,8,128], index: 2, kind: output, shape index: {}]  }
   0x1   :  { %8 = vsyncpa [#allocation7], 0 }
   0x2   :  { %9 = vsyncpa [#allocation5], 0  ;;  %s208_s9 = smov [#allocation3]   ;;  %s136_s13 = scalar_lea.hbm %s270_s0, 256 }
   0x3   :  { %s19_s10 = sshll.u32 %s208_s9, 4  ;;  %p137_p0 = scmp.ne.s32.totalorder %s270_s0, %s136_s13  ;;  %s20_s10 = int_to_ptr.vmem [resolvable:$true] %s19_s10 }
   0x4   :  { %p140_p1 = scmp.lt.u32.totalorder %s136_s13, %s270_s0 }
   0x6   :  { %p142_p2 = pnand %p140_p1, %p137_p0 }
   0x8   :  { %145 = shalt.err (!%p142_p2)
}
   0x9   :  { %s146_s18 = scalar_lea.vmem %s20_s10, 256  ;;  %p151_p4 = scmp.lt.s32.totalorder %s20_s10, %s20_s10 }
   0xa   :  { %p147_p3 = scmp.ne.s32.totalorder %s20_s10, %s146_s18  ;;  %p152_p5 = scmp.lt.s32.totalorder %s146_s18, %s146_s18 }
   0xc   :  { %p153_p6 = por %p152_p5, %p151_p4 }
   0xe   :  { %p154_p7 = pnand %p153_p6, %p147_p3 }
  0x10   :  { %157 = shalt.err (!%p154_p7)
}
  0x11   :  { %s209_s19 = smov 128   ;;  %s210_s20 = smov 8  }
  0x12   :  { %25 = dma.hbm_to_vmem [thread:$0]  %s270_s0, 256, %s20_s10, [#allocation4], %s209_s19, %s209_s19, %s210_s20  }
  0x13   :  { %s211_s23 = smov [#allocation6]   ;;  %s158_s27 = scalar_lea.hbm %s271_s1, 256 }
  0x14   :  { %s35_s24 = sshll.u32 %s211_s23, 4  ;;  %p159_p8 = scmp.ne.s32.totalorder %s271_s1, %s158_s27  ;;  %s36_s24 = int_to_ptr.vmem [resolvable:$true] %s35_s24 }
  0x15   :  { %p162_p9 = scmp.lt.u32.totalorder %s158_s27, %s271_s1 }
  0x17   :  { %p164_p10 = pnand %p162_p9, %p159_p8 }
  0x19   :  { %167 = shalt.err (!%p164_p10)
}
  0x1a   :  { %s168_s4 = scalar_lea.vmem %s36_s24, 256  ;;  %p173_p12 = scmp.lt.s32.totalorder %s36_s24, %s36_s24 }
  0x1b   :  { %p169_p11 = scmp.ne.s32.totalorder %s36_s24, %s168_s4  ;;  %p174_p13 = scmp.lt.s32.totalorder %s168_s4, %s168_s4 }
  0x1d   :  { %p175_p0 = por %p174_p13, %p173_p12 }
  0x1f   :  { %p176_p1 = pnand %p175_p0, %p169_p11 }
  0x21   :  { %179 = shalt.err (!%p176_p1)
}
  0x22   :  { %41 = dma.hbm_to_vmem [thread:$0]  %s271_s1, 256, %s36_s24, [#allocation7], %s209_s19, %s209_s19, %s210_s20  }
  0x23   :  { %202 = dma.done.wait [#allocation4], 256  }
  0x24   :  { %203 = vsyncadd [#allocation4], 4294967040 }
  0x25   :  { %204 = dma.done.wait [#allocation7], 256  }
  0x26   :  { %205 = vsyncadd [#allocation7], 4294967040  ;;  %v57_v0 = vld [vmem:[#allocation3] sm:$0xff]  ;;  %v58_v1 = vld [vmem:[#allocation3 + $0x8] sm:$0xff]  ;;  %s212_s1 = smov [#allocation8]  }
  0x27   :  { %v59_v2 = vld [vmem:[#allocation6] sm:$0xff]  ;;  %v60_v3 = vld [vmem:[#allocation6 + $0x8] sm:$0xff]  ;;  %v63_v4 = vsub.f32 1.0, %v57_v0  ;;  %v64_v5 = vsub.f32 1.0, %v58_v1  ;;  %s115_s6 = sshll.u32 %s212_s1, 4  ;;  %s116_s6 = int_to_ptr.vmem [resolvable:$true] %s115_s6 }
  0x28   :  { %vm61_vm0 = vcmp.gt.f32.partialorder %v59_v2, 0.0  ;;  %vm62_vm1 = vcmp.gt.f32.partialorder %v60_v3, 0.0  ;;  %s180_s9 = scalar_lea.vmem %s116_s6, 128  ;;  %p185_p3 = scmp.lt.s32.totalorder %s116_s6, %s116_s6 }
  0x29   :  { %v65_v6 = vadd.f32 0.05, %v63_v4  ;;  %v66_v7 = vadd.f32 0.05, %v64_v5  ;;  %p181_p2 = scmp.ne.s32.totalorder %s116_s6, %s180_s9  ;;  %p186_p4 = scmp.lt.s32.totalorder %s180_s9, %s180_s9 }
  0x2b   :  { %v67_v8 = vmin.f32 %v65_v6, 1.0  ;;  %v68_v9 = vmin.f32 %v66_v7, 1.0  ;;  %p187_p5 = por %p186_p4, %p185_p3 }
  0x2d   :  { %v69_v10 = vsel %vm61_vm0, %v57_v0, %v67_v8  ;;  %v70_v11 = vsel %vm62_vm1, %v58_v1, %v68_v9  ;;  %v77_v12 = vsub.f32 1.0, %v67_v8  ;;  %v78_v13 = vsub.f32 1.0, %v68_v9  ;;  %p188_p6 = pnand %p187_p5, %p181_p2 }
  0x2e   :  { %v71_v14 = vmax.f32 %v69_v10, 1e-08  ;;  %v72_v15 = vmax.f32 %v70_v11, 1e-08 }
  0x2f   :  { %v79_v16 = vsel %vm61_vm0, %v63_v4, %v77_v12  ;;  %v80_v17 = vsel %vm62_vm1, %v64_v5, %v78_v13 }
  0x30   :  { %132 = vlog2.f32 %v71_v14  ;;  %v81_v18 = vmul.f32 %v79_v16, %v79_v16  ;;  %v82_v19 = vmul.f32 %v80_v17, %v80_v17 }
  0x31   :  { %134 = vlog2.f32 %v72_v15 }
  0x32   :  { %v83_v20 = vmul.f32 %v81_v18, %v81_v18  ;;  %v84_v21 = vmul.f32 %v82_v19, %v82_v19 }
  0x34   :  { %v85_v23 = vsel %vm61_vm0, %v63_v4, %v83_v20  ;;  %v86_v26 = vsel %vm62_vm1, %v64_v5, %v84_v21 }
  0x3a   :  { %v133_v22 = vpop.eup %132 }
  0x3b   :  { %v135_v24 = vpop.eup %134  ;;  %v74_v25 = vmul.f32 0.6931472, %v133_v22 }
  0x3c   :  { %v76_v27 = vmul.f32 0.6931472, %v135_v24 }
  0x3d   :  { %v87_v28 = vmul.f32 %v85_v23, %v74_v25 }
  0x3e   :  { %v88_v29 = vmul.f32 %v86_v26, %v76_v27 }
  0x40   :  { %v90_v30 = vadd.f32 %v88_v29, %v87_v28 }
  0x42   :  { %97 = vadd.xlane.f32.xlu0 %v90_v30 }
  0xcf   :  { %v98_v31 = vpop.xlane.xlu0 %97 }
  0xd0   :  { %v99_v32 = vrot.slane %v98_v31, 4 }
  0xd2   :  { %v100_v33 = vadd.f32 %v99_v32, %v98_v31 }
  0xd4   :  { %v101_v34 = vrot.slane %v100_v33, 2 }
  0xd6   :  { %v102_v35 = vadd.f32 %v101_v34, %v100_v33 }
  0xd8   :  { %v103_v36 = vrot.slane %v102_v35, 1 }
  0xda   :  { %v104_v37 = vadd.f32 %v103_v36, %v102_v35 }
  0xdc   :  { %125 = vpush %v104_v37 }
 0x10d   :  { %s126_s7 = spop %125 }
 0x10e   :  { %s106_s8 = ssub.f32 0.0, %s126_s7 }
 0x110   :  { %v107_v38 = vstv %s106_s8 }
 0x111   :  { %108 = vst [vmem:[#allocation8] sm:$0xff] %v107_v38 }
 0x112   :  { %191 = shalt.err (!%p188_p6)
}
 0x113   :  { %s192_s12 = scalar_lea.hbm %s272_s2, 128 }
 0x114   :  { %p193_p7 = scmp.ne.s32.totalorder %s272_s2, %s192_s12  ;;  %p196_p8 = scmp.lt.u32.totalorder %s192_s12, %s272_s2 }
 0x116   :  { %p198_p9 = pnand %p196_p8, %p193_p7 }
 0x118   :  { %201 = shalt.err (!%p198_p9)
}
 0x119   :  { %118 = dma.vmem_to_hbm [thread:$0]  %s116_s6, 128, %s272_s2, [#allocation5]  }
 0x11a   :  { %206 = dma.done.wait [#allocation5], 128  }
 0x11b   :  { %207 = vsyncadd [#allocation5], 4294967168 }
 0x11c   :  { %122 = vsyncpa [#allocation4], 1 }
 0x11d   :  { %123 = vsyncpa [#allocation7], 1 }
 0x11e   :  { %124 = vsyncpa [#allocation5], 1 }

</bundles_post_ra>
